<compile_context>
chip_gen: v7x
topology: tpu7x:2x2x1
jax: 0.10.0
libtpu: 0.0.40
codegen_flags: <defaults>
</compile_context>

<pallas_src>
import functools

import jax
import jax.numpy as jnp
from jax.experimental import pallas as pl
from jax.experimental.pallas import tpu as pltpu


_VMEM_LIMIT_BYTES = 32 * 1024 * 1024     # explicit scoped-VMEM request (safe on v5e/v6e/v7x)
_VMEM_TILE_BUDGET = 24 * 1024 * 1024     # what we allow our double-buffered tiles to occupy
_WEIGHT_TILE_BUDGET = 8 * 1024 * 1024    # budget for the double-buffered weight tile alone


def _round_up(x, m):
    return ((x + m - 1) // m) * m


def _select_weight_tiles(kp0, np0):
    """Pick (tk, tn) for the bf16 weight so its double-buffered tile fits the budget."""
    bf16 = 2

    def wbytes(tk, tn):
        return 2 * tk * tn * bf16  # double-buffered weight tile

    tk, tn = kp0, np0
    if wbytes(tk, tn) <= _WEIGHT_TILE_BUDGET:
        return tk, tn
    # Split N first: keeps a single K step (no accumulator pass, bias added once).
    while tn > 512 and wbytes(tk, tn) > _WEIGHT_TILE_BUDGET:
        tn = max(512, _round_up(tn // 2, 128))
    if wbytes(tk, tn) <= _WEIGHT_TILE_BUDGET:
        return tk, tn
    # Only then split K (introduces the 3-D reduction grid).
    while tk > 512 and wbytes(tk, tn) > _WEIGHT_TILE_BUDGET:
        tk = max(512, _round_up(tk // 2, 128))
    return tk, tn


def _select_tm(mp, tk, tn, k_tiled):
    """Largest bf16-sublane-aligned M tile (ideally the whole batch) under the budget."""
    in_b, out_b, acc_b = 2, 4, 4
    fixed = 2 * tk * tn * in_b + 2 * tn * 4  # weight + bias, double-buffered

    def footprint(tm):
        f = fixed + 2 * tm * tk * in_b + 2 * tm * tn * out_b
        if k_tiled:
            f += tm * tn * acc_b
        return f

    tm = mp
    while tm > 16 and footprint(tm) > _VMEM_TILE_BUDGET:
        tm = max(16, _round_up(tm // 2, 16))
    return tm


def _fc_kernel_single(x_ref, w_ref, b_ref, o_ref):
    # x_ref: (tm, Kp) bf16   w_ref: (Kp, tn) bf16   b_ref: (1, tn) f32   o_ref: (tm, tn) f32
    o_ref[...] = (
        jnp.dot(x_ref[...], w_ref[...], preferred_element_type=jnp.float32)
        + b_ref[...]
    ).astype(o_ref.dtype)


def _fc_kernel_acc(x_ref, w_ref, b_ref, o_ref, acc_ref):
    # x_ref: (tm, tk) bf16   w_ref: (tk, tn) bf16   b_ref: (1, tn) f32
    # o_ref: (tm, tn) f32    acc_ref: (tm, tn) f32
    @pl.when(pl.program_id(2) == 0)
    def _init():
        acc_ref[...] = jnp.zeros_like(acc_ref)

    acc_ref[...] += jnp.dot(x_ref[...], w_ref[...], preferred_element_type=jnp.float32)

    @pl.when(pl.program_id(2) == pl.num_programs(2) - 1)
    def _finalize():
        o_ref[...] = (acc_ref[...] + b_ref[...]).astype(o_ref.dtype)


@functools.partial(jax.jit, static_argnames=("n_out", "tk", "tn"))
def fc_head_matmul(x2d, w_padded, b_padded, *, n_out, tk, tn):
    """out = x2d @ W + b with a Pallas matmul (bf16 inputs, f32 accumulate).

    x2d:      [M, K]   activations (any float dtype; cast to bf16 here)
    w_padded: [Kp, Np] bf16, already zero-padded to multiples of (tk, tn)
    b_padded: [1, Np]  f32, already zero-padded
    returns   [M, n_out] f32
    """
    M, K = x2d.shape
    Kp, Np = w_padded.shape

    k_tiled = Kp // tk > 1
    mp16 = _round_up(M, 16)                      # bf16 sublane packing on the M axis
    tm = _select_tm(mp16, tk, tn, k_tiled)
    Mp = _round_up(M, tm)

    # Only the (small) activation tensor gets padded / cast per call; zero
    # padding is a mathematical no-op for the matmul and is sliced off below.
    if Mp != M or Kp != K:
        x2d = jnp.pad(x2d, ((0, Mp - M), (0, Kp - K)))
    xp = x2d.astype(jnp.bfloat16)

    n_m, n_n, n_k = Mp // tm, Np // tn, Kp // tk
    flops = 2 * Mp * Np * Kp
    bytes_accessed = (
        2 * Mp * Kp * n_n          # x re-streamed per N tile
        + 2 * Kp * Np * n_m        # W re-streamed per M tile (n_m == 1 when batch fits)
        + 4 * Np
        + 4 * Mp * Np
    )

    if n_k == 1:
        # Single K step: whole weight column block resident, no accumulator.
        out_p = pl.pallas_call(
            _fc_kernel_single,
            out_shape=jax.ShapeDtypeStruct((Mp, Np), jnp.float32),
            grid_spec=pltpu.PrefetchScalarGridSpec(
                num_scalar_prefetch=0,
                grid=(n_m, n_n),
                in_specs=[
                    pl.BlockSpec((tm, tk), lambda i, j: (i, 0)),
                    pl.BlockSpec((tk, tn), lambda i, j: (0, j)),
                    pl.BlockSpec((1, tn), lambda i, j: (0, j)),
                ],
                out_specs=pl.BlockSpec((tm, tn), lambda i, j: (i, j)),
            ),
            compiler_params=pltpu.CompilerParams(
                dimension_semantics=("parallel", "parallel"),
                vmem_limit_bytes=_VMEM_LIMIT_BYTES,
            ),
            cost_estimate=pl.CostEstimate(
                flops=flops, transcendentals=0, bytes_accessed=bytes_accessed
            ),
        )(xp, w_padded, b_padded)
    else:
        out_p = pl.pallas_call(
            _fc_kernel_acc,
            out_shape=jax.ShapeDtypeStruct((Mp, Np), jnp.float32),
            grid_spec=pltpu.PrefetchScalarGridSpec(
                num_scalar_prefetch=0,
                grid=(n_m, n_n, n_k),
                in_specs=[
                    pl.BlockSpec((tm, tk), lambda i, j, k: (i, k)),
                    pl.BlockSpec((tk, tn), lambda i, j, k: (k, j)),
                    pl.BlockSpec((1, tn), lambda i, j, k: (0, j)),
                ],
                out_specs=pl.BlockSpec((tm, tn), lambda i, j, k: (i, j)),
                scratch_shapes=[pltpu.VMEM((tm, tn), jnp.float32)],
            ),
            compiler_params=pltpu.CompilerParams(
                dimension_semantics=("parallel", "parallel", "arbitrary"),
                vmem_limit_bytes=_VMEM_LIMIT_BYTES,
            ),
            cost_estimate=pl.CostEstimate(
                flops=flops, transcendentals=0, bytes_accessed=bytes_accessed
            ),
        )(xp, w_padded, b_padded)

    return out_p[:M, :n_out]


class FCHeadPallas:
    """Mirror of the PyTorch FCHead (num_fcs=0, no pool): flatten + Linear + reshape."""

    # TODO(synk): num_fcs > 0 (FCModules stack) and the optional `pool` module are
    # not implemented; the defaults used by the spec make them identity.

    def __init__(self, in_channels, out_channels, num_class, batch_max_length,
                 from_layer, key):
        assert out_channels == (batch_max_length + 1) * num_class
        self.num_class = num_class
        self.batch_max_length = batch_max_length
        self.from_layer = from_layer
        self.in_channels = in_channels
        self.out_channels = out_channels

        kw, _ = jax.random.split(key)
        # init_weights() applies xavier_normal_ to nn.Linear weights, bias = 0.
        std = (2.0 / (in_channels + out_channels)) ** 0.5
        # Stored as [in, out] so the kernel needs no transpose.
        self.weight = std * jax.random.normal(kw, (in_channels, out_channels), jnp.float32)
        self.bias = jnp.zeros((out_channels,), jnp.float32)

        # --- one-time parameter prep (padding + bf16 cast happen here, not per call) ---
        kp0 = _round_up(in_channels, 128)
        np0 = _round_up(out_channels, 128)
        self.tk, self.tn = _select_weight_tiles(kp0, np0)
        kp = _round_up(in_channels, self.tk)
        npad = _round_up(out_channels, self.tn)
        w = self.weight
        if (kp, npad) != (in_channels, out_channels):
            w = jnp.pad(w, ((0, kp - in_channels), (0, npad - out_channels)))
        self.weight_padded = w.astype(jnp.bfloat16)
        b = self.bias
        if npad != out_channels:
            b = jnp.pad(b, (0, npad - out_channels))
        self.bias_padded = b.reshape(1, npad).astype(jnp.float32)

    def __call__(self, feats):
        x = feats[self.from_layer]
        batch_size = x.shape[0]
        # x.contiguous().view(batch_size, -1): a pure reshape, no transpose needed.
        x2d = x.reshape(batch_size, -1)
        out = fc_head_matmul(
            x2d, self.weight_padded, self.bias_padded,
            n_out=self.out_channels, tk=self.tk, tn=self.tn,
        )
        return out.reshape(-1, self.batch_max_length + 1, self.num_class)


if __name__ == "__main__":
    key = jax.random.PRNGKey(0)
    kx, kp = jax.random.split(key)

    B, C, H, W = 2, 4, 16, 16
    num_class, batch_max_length = 16, 7
    in_channels = C * H * W                             # 1024
    out_channels = (batch_max_length + 1) * num_class   # 128

    x = jax.random.normal(kx, (B, C, H, W), jnp.float32)
    feats = {"cnn_feat": x, "other": jnp.zeros((B, 8, 4, 4), jnp.float32)}

    head = FCHeadPallas(
        in_channels=in_channels,
        out_channels=out_channels,
        num_class=num_class,
        batch_max_length=batch_max_length,
        from_layer="cnn_feat",
        key=kp,
    )
    out = head(feats)
    out = jax.block_until_ready(out)

    # Reference: flatten + linear + reshape, with inputs rounded to bf16 exactly
    # as the kernel consumes them (accumulation stays f32 in both).
    x2d = x.reshape(B, -1)
    x_bf = x2d.astype(jnp.bfloat16).astype(jnp.float32)
    w_bf = head.weight.astype(jnp.bfloat16).astype(jnp.float32)
    ref = (x_bf @ w_bf + head.bias).reshape(-1, batch_max_length + 1, num_class)

    assert out.shape == (B, batch_max_length + 1, num_class)
    assert jnp.allclose(out, ref, atol=1e-2, rtol=1e-2), (
        float(jnp.max(jnp.abs(out - ref)))
    )

    print("KERNEL_OK")
</pallas_src>

<mosaic_0001>
module attributes {stable_mosaic.version = 11 : i64} {
  func.func @_fc_kernel_single(%arg0: i32, %arg1: i32, %arg2: memref<16x1024xbf16, #tpu.memory_space<vmem>>, %arg3: memref<1024x128xbf16, #tpu.memory_space<vmem>>, %arg4: memref<1x128xf32, #tpu.memory_space<vmem>>, %arg5: memref<16x128xf32, #tpu.memory_space<vmem>>) attributes {dimension_semantics = [#tpu.dimension_semantics<parallel>, #tpu.dimension_semantics<parallel>], iteration_bounds = array<i64: 1, 1>, scalar_prefetch = 0 : i64, scratch_operands = 0 : i64, tpu.core_type = #tpu.core_type<tc>, window_params = [{transform_indices = @transform_0, window_bounds = array<i64: 16, 1024>}, {transform_indices = @transform_1, window_bounds = array<i64: 1024, 128>}, {transform_indices = @transform_2, window_bounds = array<i64: 1, 128>}, {transform_indices = @transform_3, window_bounds = array<i64: 16, 128>}]} {
    %c0 = arith.constant 0 : index
    %c0_0 = arith.constant 0 : index
    %0 = vector.load %arg2[%c0, %c0_0] : memref<16x1024xbf16, #tpu.memory_space<vmem>>, vector<16x1024xbf16>
    %c0_1 = arith.constant 0 : index
    %c0_2 = arith.constant 0 : index
    %1 = vector.load %arg3[%c0_1, %c0_2] : memref<1024x128xbf16, #tpu.memory_space<vmem>>, vector<1024x128xbf16>
    %cst = arith.constant dense<0.000000e+00> : vector<16x128xf32>
    %2 = tpu.matmul %0, %1, %cst {dimension_numbers = #tpu.dot_dimension_numbers<[1], [0], [0], [1], [0, 0, 1, 1], [], []>} : vector<16x1024xbf16>, vector<1024x128xbf16>, vector<16x128xf32> -> vector<16x128xf32>
    %c0_3 = arith.constant 0 : index
    %c0_4 = arith.constant 0 : index
    %3 = vector.load %arg4[%c0_3, %c0_4] : memref<1x128xf32, #tpu.memory_space<vmem>>, vector<1x128xf32>
    %4 = vector.broadcast %3 : vector<1x128xf32> to vector<16x128xf32>
    %5 = arith.addf %2, %4 : vector<16x128xf32>
    %c0_5 = arith.constant 0 : index
    %c0_6 = arith.constant 0 : index
    %6 = vector.load %arg5[%c0_5, %c0_6] : memref<16x128xf32, #tpu.memory_space<vmem>>, vector<16x128xf32>
    tpu.vector_store %arg5[%c0_5, %c0_6], %5 {strides = array<i32>} : memref<16x128xf32, #tpu.memory_space<vmem>>, vector<16x128xf32>,
    return
  }
  func.func @transform_0(%arg0: i32, %arg1: i32) -> (i32, i32) {
    %c0_i32 = arith.constant 0 : i32
    %c0_i32_0 = arith.constant 0 : i32
    return %arg0, %c0_i32 : i32, i32
  }
  func.func @transform_1(%arg0: i32, %arg1: i32) -> (i32, i32) {
    %c0_i32 = arith.constant 0 : i32
    %c0_i32_0 = arith.constant 0 : i32
    return %c0_i32, %arg1 : i32, i32
  }
  func.func @transform_2(%arg0: i32, %arg1: i32) -> (i32, i32) {
    %c0_i32 = arith.constant 0 : i32
    %c0_i32_0 = arith.constant 0 : i32
    return %c0_i32, %arg1 : i32, i32
  }
  func.func @transform_3(%arg0: i32, %arg1: i32) -> (i32, i32) {
    %c0_i32 = arith.constant 0 : i32
    return %arg0, %arg1 : i32, i32
  }
}

</mosaic_0001>

<bundles_post_ra>
// kernel: fc_head_matmul.1
= control target key start
LH: loop header
LB: loop body
LE: loop exit
PB: predicated region body
PF: predicated region fallthrough
CT: control target
= control target key end

     0   :  { %8 = vsyncpa [#allocation3], 0  ;;  %s1019_s12 = smov [#allocation2]   ;;  %s1087_s0 = inlined_call_operand.vmem [shape: bf16[16,1024], index: 0, kind: input, shape index: {}]   ;;  %s1088_s1 = inlined_call_operand.hbm [shape: bf16[1024,128], index: 1, kind: input, shape index: {}]   ;;  %s1089_s2 = inlined_call_operand.vmem [shape: f32[1,128], index: 2, kind: input, shape index: {}]   ;;  %s1090_s3 = inlined_call_operand.vmem [shape: f32[16,128], index: 3, kind: output, shape index: {}]  }
   0x1   :  { %s16_s13 = sshll.u32 %s1019_s12, 4  ;;  %s995_s16 = scalar_lea.hbm %s1088_s1, 8192  ;;  %s17_s13 = int_to_ptr.vmem [resolvable:$true] %s16_s13 }
   0x2   :  { %p996_p0 = scmp.ne.s32.totalorder %s1088_s1, %s995_s16  ;;  %p999_p1 = scmp.lt.u32.totalorder %s995_s16, %s1088_s1 }
   0x4   :  { %p1001_p2 = pnand %p999_p1, %p996_p0 }
   0x6   :  { %1004 = shalt.err (!%p1001_p2)
}
   0x7   :  { %s1005_s21 = scalar_lea.vmem %s17_s13, 8192  ;;  %p1010_p4 = scmp.lt.s32.totalorder %s17_s13, %s17_s13 }
   0x8   :  { %p1006_p3 = scmp.ne.s32.totalorder %s17_s13, %s1005_s21  ;;  %p1011_p5 = scmp.lt.s32.totalorder %s1005_s21, %s1005_s21 }
   0xa   :  { %p1012_p6 = por %p1011_p5, %p1010_p4 }
   0xc   :  { %p1013_p7 = pnand %p1012_p6, %p1006_p3 }
   0xe   :  { %1016 = shalt.err (!%p1013_p7)
}
   0xf   :  { %s1020_s22 = smov 64   ;;  %s1021_s23 = smov 4  }
  0x10   :  { %22 = dma.hbm_to_vmem [thread:$0]  %s1088_s1, 8192, %s17_s13, [#allocation3], %s1020_s22, %s1020_s22, %s1021_s23  }
  0x11   :  { %1017 = dma.done.wait [#allocation3], 8192  }
  0x12   :  { %1018 = vsyncadd [#allocation3], 4294959104  ;;  %v931_v0 = vld [vmem:[#allocation2 + $0x40] sm:$0xff]   ;;  %v935_v4 = vld [vmem:[#allocation2 + $0x48] sm:$0xff]  }
  0x13   :  { %v932_v1 = vld [vmem:[#allocation2 + $0xc0] sm:$0xff]   ;;  %840 = vmatprep.subr.bf16.mxu0 %v931_v0  ;;  %v936_v5 = vld [vmem:[#allocation2 + $0xc8] sm:$0xff]   ;;  %v939_v8 = vld [vmem:[#allocation2 + $0x50] sm:$0xff]  }
  0x14   :  { %v933_v2 = vld [vmem:[#allocation2] sm:$0xff]   ;;  %862 = vmatprep.subr.bf16.mxu1 %v932_v1  ;;  %v937_v6 = vld [vmem:[#allocation2 + $0x8] sm:$0xff]   ;;  %v940_v9 = vld [vmem:[#allocation2 + $0xd0] sm:$0xff]  }
  0x15   :  { %v934_v3 = vld [vmem:[#allocation2 + $0x80] sm:$0xff]   ;;  %841 = vmatpush3.bf16.msra.mxu0 %v933_v2  ;;  %v938_v7 = vld [vmem:[#allocation2 + $0x88] sm:$0xff]   ;;  %v941_v10 = vld [vmem:[#allocation2 + $0x10] sm:$0xff]  }
  0x16   :  { %863 = vmatpush3.bf16.msra.mxu1 %v934_v3  ;;  %842 = vmatprep.subr.bf16.mxu0 %v935_v4  ;;  %v942_v11 = vld [vmem:[#allocation2 + $0x90] sm:$0xff]   ;;  %v943_v12 = vld [vmem:[#allocation2 + $0x58] sm:$0xff]   ;;  %v947_v16 = vld [vmem:[#allocation2 + $0x60] sm:$0xff]  }
  0x17   :  { %864 = vmatprep.subr.bf16.mxu1 %v936_v5  ;;  %v944_v13 = vld [vmem:[#allocation2 + $0xd8] sm:$0xff]   ;;  %v948_v17 = vld [vmem:[#allocation2 + $0xe0] sm:$0xff]   ;;  %v951_v20 = vld [vmem:[#allocation2 + $0x68] sm:$0xff]  }
  0x18   :  { %v945_v14 = vld [vmem:[#allocation2 + $0x18] sm:$0xff]   ;;  %v949_v18 = vld [vmem:[#allocation2 + $0x20] sm:$0xff]   ;;  %v952_v21 = vld [vmem:[#allocation2 + $0xe8] sm:$0xff]  }
  0x19   :  { %843 = vmatpush3.bf16.msra.mxu0 %v937_v6  ;;  %v946_v15 = vld [vmem:[#allocation2 + $0x98] sm:$0xff]   ;;  %v950_v19 = vld [vmem:[#allocation2 + $0xa0] sm:$0xff]   ;;  %v953_v22 = vld [vmem:[#allocation2 + $0x28] sm:$0xff]  }
  0x1a   :  { %865 = vmatpush3.bf16.msra.mxu1 %v938_v7  ;;  %844 = vmatprep.subr.bf16.mxu0 %v939_v8  ;;  %v954_v23 = vld [vmem:[#allocation2 + $0xa8] sm:$0xff]   ;;  %v955_v24 = vld [vmem:[#allocation2 + $0x70] sm:$0xff]   ;;  %v959_v28 = vld [vmem:[#allocation2 + $0x78] sm:$0xff]  }
  0x1b   :  { %866 = vmatprep.subr.bf16.mxu1 %v940_v9  ;;  %v956_v25 = vld [vmem:[#allocation2 + $0xf0] sm:$0xff]   ;;  %v960_v29 = vld [vmem:[#allocation2 + $0xf8] sm:$0xff]   ;;  %v29_v32 = vld [vmem:[%s1087_s0] sm:$0xff] }
  0x1c   :  { %v957_v26 = vld [vmem:[#allocation2 + $0x30] sm:$0xff]   ;;  %v961_v30 = vld [vmem:[#allocation2 + $0x38] sm:$0xff]   ;;  %v33_v33 = vld [vmem:[%s1087_s0 + $0x20] sm:$0xff] }
  0x1d   :  { %845 = vmatpush3.bf16.msra.mxu0 %v941_v10  ;;  %v958_v27 = vld [vmem:[#allocation2 + $0xb0] sm:$0xff]   ;;  %v962_v31 = vld [vmem:[#allocation2 + $0xb8] sm:$0xff]   ;;  %v30_v34 = vld [vmem:[%s1087_s0 + $0x8] sm:$0xff]  ;;  %v768_v35 = vcombine.low %v29_v32, %v33_v33  ;;  %v769_v36 = vcombine.high %v29_v32, %v33_v33 }
  0x1e   :  { %867 = vmatpush3.bf16.msra.mxu1 %v942_v11  ;;  %846 = vmatprep.subr.bf16.mxu0 %v943_v12  ;;  %v34_v37 = vld [vmem:[%s1087_s0 + $0x28] sm:$0xff]  ;;  %v963_v40 = vld [vmem:[#allocation2 + $0x140] sm:$0xff]   ;;  %v971_v48 = vld [vmem:[#allocation2 + $0x150] sm:$0xff]  }
  0x1f   :  { %868 = vmatprep.subr.bf16.mxu1 %v944_v13  ;;  %v770_v38 = vcombine.low %v30_v34, %v34_v37  ;;  %v771_v39 = vcombine.high %v30_v34, %v34_v37  ;;  %628 = vmatprep.mubr.bf16.mxu0 %v769_v36  ;;  %v964_v41 = vld [vmem:[#allocation2 + $0x1c0] sm:$0xff]   ;;  %v967_v44 = vld [vmem:[#allocation2 + $0x148] sm:$0xff]   ;;  %v972_v49 = vld [vmem:[#allocation2 + $0x1d0] sm:$0xff]  }
  0x20   :  { %v965_v42 = vld [vmem:[#allocation2 + $0x100] sm:$0xff]   ;;  %v968_v45 = vld [vmem:[#allocation2 + $0x1c8] sm:$0xff]   ;;  %v973_v50 = vld [vmem:[#allocation2 + $0x110] sm:$0xff]  }
  0x21   :  { %847 = vmatpush3.bf16.msra.mxu0 %v945_v14  ;;  %669 = vmatprep.mubr.bf16.mxu1 %v771_v39  ;;  %v966_v43 = vld [vmem:[#allocation2 + $0x180] sm:$0xff]   ;;  %v969_v46 = vld [vmem:[#allocation2 + $0x108] sm:$0xff]   ;;  %v974_v51 = vld [vmem:[#allocation2 + $0x190] sm:$0xff]  }
  0x22   :  { %869 = vmatpush3.bf16.msra.mxu1 %v946_v15  ;;  %848 = vmatprep.subr.bf16.mxu0 %v947_v16  ;;  %v970_v47 = vld [vmem:[#allocation2 + $0x188] sm:$0xff]   ;;  %v975_v52 = vld [vmem:[#allocation2 + $0x158] sm:$0xff]   ;;  %v979_v56 = vld [vmem:[#allocation2 + $0x160] sm:$0xff]  }
  0x23   :  { %870 = vmatprep.subr.bf16.mxu1 %v948_v17  ;;  %v976_v53 = vld [vmem:[#allocation2 + $0x1d8] sm:$0xff]   ;;  %v980_v57 = vld [vmem:[#allocation2 + $0x1e0] sm:$0xff]   ;;  %v983_v60 = vld [vmem:[#allocation2 + $0x168] sm:$0xff]  }
  0x24   :  { %v977_v54 = vld [vmem:[#allocation2 + $0x118] sm:$0xff]   ;;  %v981_v58 = vld [vmem:[#allocation2 + $0x120] sm:$0xff]   ;;  %v984_v61 = vld [vmem:[#allocation2 + $0x1e8] sm:$0xff]  }
  0x25   :  { %849 = vmatpush3.bf16.msra.mxu0 %v949_v18  ;;  %v978_v55 = vld [vmem:[#allocation2 + $0x198] sm:$0xff]   ;;  %v982_v59 = vld [vmem:[#allocation2 + $0x1a0] sm:$0xff]   ;;  %v985_v62 = vld [vmem:[#allocation2 + $0x128] sm:$0xff]  }
  0x26   :  { %871 = vmatpush3.bf16.msra.mxu1 %v950_v19  ;;  %850 = vmatprep.subr.bf16.mxu0 %v951_v20  ;;  %v986_v63 = vld [vmem:[#allocation2 + $0x1a8] sm:$0xff]   ;;  %v987_v0 = vld [vmem:[#allocation2 + $0x170] sm:$0xff]   ;;  %v991_v4 = vld [vmem:[#allocation2 + $0x178] sm:$0xff]  }
  0x27   :  { %872 = vmatprep.subr.bf16.mxu1 %v952_v21  ;;  %v988_v1 = vld [vmem:[#allocation2 + $0x1f0] sm:$0xff]   ;;  %v992_v5 = vld [vmem:[#allocation2 + $0x1f8] sm:$0xff]   ;;  %v767_v18 = vld [vmem:[%s1089_s2] ss:$0 sm:$0xff] }
  0x28   :  { %v989_v2 = vld [vmem:[#allocation2 + $0x130] sm:$0xff]   ;;  %v993_v6 = vld [vmem:[#allocation2 + $0x138] sm:$0xff]  }
  0x29   :  { %851 = vmatpush3.bf16.msra.mxu0 %v953_v22  ;;  %v990_v3 = vld [vmem:[#allocation2 + $0x1b0] sm:$0xff]   ;;  %v994_v7 = vld [vmem:[#allocation2 + $0x1b8] sm:$0xff]  }
  0x2a   :  { %873 = vmatpush3.bf16.msra.mxu1 %v954_v23  ;;  %852 = vmatprep.subr.bf16.mxu0 %v955_v24  ;;  %v31_v8 = vld [vmem:[%s1087_s0 + $0x10] sm:$0xff]  ;;  %v32_v12 = vld [vmem:[%s1087_s0 + $0x18] sm:$0xff] }
  0x2b   :  { %874 = vmatprep.subr.bf16.mxu1 %v956_v25  ;;  %v35_v9 = vld [vmem:[%s1087_s0 + $0x30] sm:$0xff]  ;;  %v36_v13 = vld [vmem:[%s1087_s0 + $0x38] sm:$0xff] }
  0x2c   :  { %v772_v10 = vcombine.low %v31_v8, %v35_v9  ;;  %v773_v11 = vcombine.high %v31_v8, %v35_v9  ;;  %v774_v14 = vcombine.low %v32_v12, %v36_v13  ;;  %v775_v15 = vcombine.high %v32_v12, %v36_v13 }
  0x2d   :  { %853 = vmatpush3.bf16.msra.mxu0 %v957_v26 }
  0x2e   :  { %875 = vmatpush3.bf16.msra.mxu1 %v958_v27  ;;  %854 = vmatprep.subr.bf16.mxu0 %v959_v28 }
  0x2f   :  { %876 = vmatprep.subr.bf16.mxu1 %v960_v29 }
  0x31   :  { %855 = vmatpush3.bf16.msra.mxu0 %v961_v30 }
  0x32   :  { %877 = vmatpush3.bf16.msra.mxu1 %v962_v31  ;;  %884 = vmatprep.subr.bf16.mxu0 %v963_v40 }
  0x33   :  { %906 = vmatprep.subr.bf16.mxu1 %v964_v41 }
  0x34   :  { %629 = vmatmul.mubr.bf16.vlgmr.msra.gmra.mrb[0].mxu0 %v768_v35 }
  0x35   :  { %670 = vmatmul.mubr.bf16.vlgmr.msra.gmra.mrb[0].mxu1 %v770_v38  ;;  %885 = vmatpush3.bf16.msra.mxu0 %v965_v42 }
  0x36   :  { %907 = vmatpush3.bf16.msra.mxu1 %v966_v43  ;;  %886 = vmatprep.subr.bf16.mxu0 %v967_v44 }
  0x37   :  { %908 = vmatprep.subr.bf16.mxu1 %v968_v45  ;;  %710 = vmatprep.mubr.bf16.mxu0 %v773_v11 }
  0x38   :  { %751 = vmatprep.mubr.bf16.mxu1 %v775_v15 }
  0x39   :  { %887 = vmatpush3.bf16.msra.mxu0 %v969_v46 }
  0x3a   :  { %909 = vmatpush3.bf16.msra.mxu1 %v970_v47  ;;  %888 = vmatprep.subr.bf16.mxu0 %v971_v48 }
  0x3b   :  { %910 = vmatprep.subr.bf16.mxu1 %v972_v49 }
  0x3d   :  { %889 = vmatpush3.bf16.msra.mxu0 %v973_v50 }
  0x3e   :  { %911 = vmatpush3.bf16.msra.mxu1 %v974_v51  ;;  %890 = vmatprep.subr.bf16.mxu0 %v975_v52 }
  0x3f   :  { %912 = vmatprep.subr.bf16.mxu1 %v976_v53 }
  0x41   :  { %891 = vmatpush3.bf16.msra.mxu0 %v977_v54 }
  0x42   :  { %913 = vmatpush3.bf16.msra.mxu1 %v978_v55  ;;  %892 = vmatprep.subr.bf16.mxu0 %v979_v56 }
  0x43   :  { %914 = vmatprep.subr.bf16.mxu1 %v980_v57 }
  0x45   :  { %893 = vmatpush3.bf16.msra.mxu0 %v981_v58 }
  0x46   :  { %915 = vmatpush3.bf16.msra.mxu1 %v982_v59  ;;  %894 = vmatprep.subr.bf16.mxu0 %v983_v60 }
  0x47   :  { %916 = vmatprep.subr.bf16.mxu1 %v984_v61 }
  0x49   :  { %895 = vmatpush3.bf16.msra.mxu0 %v985_v62 }
  0x4a   :  { %917 = vmatpush3.bf16.msra.mxu1 %v986_v63  ;;  %896 = vmatprep.subr.bf16.mxu0 %v987_v0 }
  0x4b   :  { %918 = vmatprep.subr.bf16.mxu1 %v988_v1 }
  0x4d   :  { %897 = vmatpush3.bf16.msra.mxu0 %v989_v2 }
  0x4e   :  { %919 = vmatpush3.bf16.msra.mxu1 %v990_v3  ;;  %898 = vmatprep.subr.bf16.mxu0 %v991_v4 }
  0x4f   :  { %920 = vmatprep.subr.bf16.mxu1 %v992_v5 }
  0x51   :  { %899 = vmatpush3.bf16.msra.mxu0 %v993_v6 }
  0x52   :  { %921 = vmatpush3.bf16.msra.mxu1 %v994_v7 }
  0x54   :  { %711 = vmatmul.mubr.bf16.vlgmr.msra.gmra.mrb[4].mxu0 %v772_v10 }
  0x55   :  { %752 = vmatmul.mubr.bf16.vlgmr.msra.gmra.mrb[4].mxu1 %v774_v14 }
 0x107   :  { %v856_v16 = vpop.f32.mrb[0].mxu0 }
 0x108   :  { %v878_v17 = vpop.f32.mrb[0].mxu1  ;;  %v857_v19 = vpop.f32.mrb[1].mxu0 }
 0x109   :  { %v858_v20 = vadd.f32 %v857_v19, %v856_v16  ;;  %v879_v21 = vpop.f32.mrb[1].mxu1  ;;  %v859_v22 = vpop.f32.mrb[2].mxu0 }
 0x10a   :  { %v880_v23 = vadd.f32 %v879_v21, %v878_v17  ;;  %v881_v24 = vpop.f32.mrb[2].mxu1  ;;  %v860_v25 = vpop.f32.mrb[3].mxu0 }
 0x10b   :  { %v631_v26 = vadd.f32 %v858_v20, %v767_v18  ;;  %v861_v27 = vadd.f32 %v860_v25, %v859_v22  ;;  %v882_v28 = vpop.f32.mrb[3].mxu1 }
 0x10c   :  { %v883_v29 = vadd.f32 %v882_v28, %v881_v24 }
 0x10d   :  { %v672_v30 = vadd.f32 %v880_v23, %v631_v26  ;;  %v634_v31 = vadd.f32 %v861_v27, %v767_v18 }
 0x10f   :  { %v675_v32 = vadd.f32 %v883_v29, %v634_v31 }
 0x127   :  { %v900_v33 = vpop.f32.mrb[4].mxu0 }
 0x128   :  { %v922_v34 = vpop.f32.mrb[4].mxu1  ;;  %v901_v35 = vpop.f32.mrb[5].mxu0 }
 0x129   :  { %v902_v36 = vadd.f32 %v901_v35, %v900_v33  ;;  %v923_v37 = vpop.f32.mrb[5].mxu1  ;;  %v903_v38 = vpop.f32.mrb[6].mxu0 }
 0x12a   :  { %v924_v39 = vadd.f32 %v923_v37, %v922_v34  ;;  %v925_v40 = vpop.f32.mrb[6].mxu1  ;;  %v904_v41 = vpop.f32.mrb[7].mxu0 }
 0x12b   :  { %v713_v42 = vadd.f32 %v902_v36, %v672_v30  ;;  %v905_v43 = vadd.f32 %v904_v41, %v903_v38  ;;  %v926_v44 = vpop.f32.mrb[7].mxu1 }
 0x12c   :  { %v927_v45 = vadd.f32 %v926_v44, %v925_v40 }
 0x12d   :  { %v754_v46 = vadd.f32 %v924_v39, %v713_v42  ;;  %v716_v47 = vadd.f32 %v905_v43, %v675_v32 }
 0x12f   :  { %760 = vst [vmem:[%s1090_s3] sm:$0xff] %v754_v46  ;;  %v757_v48 = vadd.f32 %v927_v45, %v716_v47 }
 0x131   :  { %761 = vst [vmem:[%s1090_s3 + $0x8] sm:$0xff] %v757_v48 }
 0x132   :  { %766 = vsyncpa [#allocation3], 1 }

</bundles_post_ra>
